<compile_context>
chip_gen: v5e
topology: v5e:2x2
jax: 0.10.0
libtpu: 0.0.40
codegen_flags: <defaults>
</compile_context>

<pallas_src>
import functools

import jax
import jax.numpy as jnp
from jax.experimental import pallas as pl
from jax.experimental.pallas import tpu as pltpu


def _round_up(x, m):
    return ((x + m - 1) // m) * m


def _cdiv(a, b):
    return (a + b - 1) // b


# -----------------------------------------------------------------------------
# Pallas kernel
# -----------------------------------------------------------------------------
def _fusion_kernel(df, n_classes, tb,
                   txt_feat_ref, img_feat_ref,
                   wt_ref, bt_ref, wi_ref, bi_ref, wc_ref, bc_ref,
                   fused_ref, txt_logits_ref, img_logits_ref,
                   txt_out_ref, img_out_ref,
                   acc_ref, both_ref):
    """grid = (batch_tiles, k_tiles).  K tiles stream the image-head weight."""
    k = pl.program_id(1)
    nk = pl.num_programs(1)

    @pl.when(k == 0)
    def _init():
        acc_ref[...] = jnp.zeros_like(acc_ref)
        # Text head hoisted out of the finalize: it overlaps with the wi DMA
        # stream and shortens the per-batch-tile serial epilogue.  The result
        # is stashed in the (k-resident) txt_out output block and in the top
        # half of the bf16 stacked-classifier scratch.
        txt_out = (jnp.dot(txt_feat_ref[...], wt_ref[...],
                           preferred_element_type=jnp.float32)
                   + bt_ref[...])                               # (TB, Dp) f32
        txt_out_ref[...] = txt_out
        both_ref[0:tb, :] = txt_out.astype(jnp.bfloat16)

    # Image head contraction: (TB, TK) bf16 @ (TK, Dp) bf16 -> f32 accumulator.
    acc_ref[...] += jnp.dot(img_feat_ref[...], wi_ref[...],
                            preferred_element_type=jnp.float32)

    @pl.when(k == nk - 1)
    def _finalize():
        img_out = acc_ref[...] + bi_ref[...]                    # (TB, Dp) f32
        img_out_ref[...] = img_out
        both_ref[tb:2 * tb, :] = img_out.astype(jnp.bfloat16)

        wc = wc_ref[...]            # bf16 (Dp, Cp)
        bc = bc_ref[...]            # f32  (1, Cp)

        # Shared classification_layer on both modalities as ONE stacked matmul
        # straight from the bf16 staging scratch.
        logits_both = (jnp.dot(both_ref[...], wc,
                               preferred_element_type=jnp.float32)
                       + bc)                                    # (2*TB, Cp)
        txt_logits = logits_both[:tb]
        img_logits = logits_both[tb:]
        txt_logits_ref[...] = txt_logits
        img_logits_ref[...] = img_logits

        # Stable logsumexp over the REAL classes only (padded lanes -> -inf).
        cp = logits_both.shape[-1]
        valid = jax.lax.broadcasted_iota(jnp.int32, (tb, cp), 1) < n_classes

        def _conf(lg):
            lg = jnp.where(valid, lg, -jnp.inf)
            m = jnp.max(lg, axis=1, keepdims=True)
            s = jnp.sum(jnp.exp(lg - m), axis=1, keepdims=True)
            return (m + jnp.log(s)) / 10.0                      # (TB, 1)

        if df:
            # Confidence-weighted fusion then classify (detach is grad-only).
            txt_out = txt_out_ref[...]
            fused = txt_out * _conf(txt_logits) + img_out * _conf(img_logits)
            fused_ref[...] = (jnp.dot(fused.astype(jnp.bfloat16), wc,
                                      preferred_element_type=jnp.float32)
                              + bc)
        else:
            fused_ref[...] = 0.5 * txt_out_ref[...] + 0.5 * img_out


# -----------------------------------------------------------------------------
# Wrapper: padding to MXU/lane-friendly shapes, grid construction, un-padding
# -----------------------------------------------------------------------------
def multimodal_early_fusion_clf(txt_feat, img_feat, params, *, df=True):
    """txt_feat: (B, Ht) pooled text features, img_feat: (B, K) flat image."""
    B, Ht = txt_feat.shape
    K = img_feat.shape[1]
    D = params["wt"].shape[1]          # before_clf_size
    C = params["wc"].shape[1]          # n_classes

    # Batch tile: one tile whenever B <= 256 (so wi is only ever streamed
    # once), 256 otherwise (fills the 256-wide MXU rows on v6e/v7x).
    TB = min(256, _round_up(max(B, 1), 8))
    Bp = _round_up(B, TB)

    Htp = _round_up(Ht, 128)
    Dp = _round_up(D, 128)
    Cp = _round_up(C, 128)

    # K tiling: make wi fully VMEM-resident (single K tile) when the bf16 slab
    # is small; otherwise pick TK ~1024 lanes but shaped to minimize padding.
    Kp128 = _round_up(K, 128)
    if Kp128 * Dp * 2 <= 6 * 1024 * 1024:
        TK = Kp128                                   # wi resident, nk == 1
    else:
        nk_target = _cdiv(K, 1024)
        TK = _round_up(_cdiv(K, nk_target), 128)     # minimal K zero-padding
    Kp = _round_up(K, TK)

    def pad2(x, r, c, dtype):
        buf = jnp.zeros((r, c), dtype)
        return buf.at[:x.shape[0], :x.shape[1]].set(x.astype(dtype))

    # bf16 matmul operands; f32 biases (added post-accumulation).
    txt_p = pad2(txt_feat, Bp, Htp, jnp.bfloat16)
    img_p = pad2(img_feat, Bp, Kp, jnp.bfloat16)
    wt_p = pad2(params["wt"], Htp, Dp, jnp.bfloat16)
    wi_p = pad2(params["wi"], Kp, Dp, jnp.bfloat16)
    wc_p = pad2(params["wc"], Dp, Cp, jnp.bfloat16)
    bt_p = pad2(params["bt"].reshape(1, -1), 1, Dp, jnp.float32)
    bi_p = pad2(params["bi"].reshape(1, -1), 1, Dp, jnp.float32)
    bc_p = pad2(params["bc"].reshape(1, -1), 1, Cp, jnp.float32)

    nb, nk = Bp // TB, Kp // TK
    fused_cols = Cp if df else Dp

    grid_spec = pltpu.PrefetchScalarGridSpec(
        num_scalar_prefetch=0,
        grid=(nb, nk),
        in_specs=[
            pl.BlockSpec((TB, Htp), lambda i, k: (i, 0)),   # txt_feat (resident over k)
            pl.BlockSpec((TB, TK), lambda i, k: (i, k)),    # img_feat (streamed over k)
            pl.BlockSpec((Htp, Dp), lambda i, k: (0, 0)),   # wt  (resident)
            pl.BlockSpec((1, Dp), lambda i, k: (0, 0)),     # bt
            pl.BlockSpec((TK, Dp), lambda i, k: (k, 0)),    # wi  (streamed over k)
            pl.BlockSpec((1, Dp), lambda i, k: (0, 0)),     # bi
            pl.BlockSpec((Dp, Cp), lambda i, k: (0, 0)),    # wc  (resident)
            pl.BlockSpec((1, Cp), lambda i, k: (0, 0)),     # bc
        ],
        out_specs=[
            pl.BlockSpec((TB, fused_cols), lambda i, k: (i, 0)),
            pl.BlockSpec((TB, Cp), lambda i, k: (i, 0)),
            pl.BlockSpec((TB, Cp), lambda i, k: (i, 0)),
            pl.BlockSpec((TB, Dp), lambda i, k: (i, 0)),
            pl.BlockSpec((TB, Dp), lambda i, k: (i, 0)),
        ],
        scratch_shapes=[
            pltpu.VMEM((TB, Dp), jnp.float32),          # image-head accumulator
            pltpu.VMEM((2 * TB, Dp), jnp.bfloat16),     # stacked classifier operand
        ],
    )

    # Rough VMEM footprint (double-buffered BlockSpecs + scratch) -> request a
    # modest scoped limit; never the full 64 MiB (v7x physical VMEM per TC).
    in_bytes = 2 * (TB * Htp * 2 + TB * TK * 2 + Htp * Dp * 2 + Dp * 4
                    + TK * Dp * 2 + Dp * 4 + Dp * Cp * 2 + Cp * 4)
    out_bytes = 2 * (TB * fused_cols * 4 + 2 * TB * Cp * 4 + 2 * TB * Dp * 4)
    scratch_bytes = TB * Dp * 4 + 2 * TB * Dp * 2
    vmem_limit = int(min(max(2 * (in_bytes + out_bytes + scratch_bytes),
                             8 * 1024 * 1024),
                         48 * 1024 * 1024))

    out_shapes = (
        jax.ShapeDtypeStruct((Bp, fused_cols), jnp.float32),  # txt_img_out (padded)
        jax.ShapeDtypeStruct((Bp, Cp), jnp.float32),          # txt_logits  (padded)
        jax.ShapeDtypeStruct((Bp, Cp), jnp.float32),          # img_logits  (padded)
        jax.ShapeDtypeStruct((Bp, Dp), jnp.float32),          # txt_out     (padded)
        jax.ShapeDtypeStruct((Bp, Dp), jnp.float32),          # img_out     (padded)
    )

    call = pl.pallas_call(
        functools.partial(_fusion_kernel, df, C, TB),
        out_shape=out_shapes,
        grid_spec=grid_spec,
        compiler_params=pltpu.CompilerParams(
            dimension_semantics=("parallel", "arbitrary"),
            vmem_limit_bytes=vmem_limit,
        ),
    )

    fused_p, txt_logits_p, img_logits_p, txt_out_p, img_out_p = call(
        txt_p, img_p, wt_p, bt_p, wi_p, bi_p, wc_p, bc_p)

    txt_logits = txt_logits_p[:B, :C]
    img_logits = img_logits_p[:B, :C]
    txt_out = txt_out_p[:B, :D]
    img_out = img_out_p[:B, :D]
    txt_img_out = fused_p[:B, :C] if df else fused_p[:B, :D]

    # Confidences recomputed from the (already returned) logits in plain JAX:
    # avoids lane-sparse (B, 1) kernel outputs; identical math (stable LSE).
    def _conf(lg):
        m = jnp.max(lg, axis=1, keepdims=True)
        return (m + jnp.log(jnp.sum(jnp.exp(lg - m), axis=1, keepdims=True))) / 10.0

    txt_conf = _conf(txt_logits)
    img_conf = _conf(img_logits)

    return (txt_img_out, txt_logits, img_logits,
            txt_conf, img_conf, txt_out, img_out)


# -----------------------------------------------------------------------------
# Glue: synthetic encoders (pooling) + deterministic parameter init
# -----------------------------------------------------------------------------
def init_params(key, *, vocab, txt_hidden, img_feat_dim, before_clf_size,
                n_classes):
    ks = jax.random.split(key, 6)
    scale = 0.02
    return {
        "emb": scale * jax.random.normal(ks[0], (vocab, txt_hidden), jnp.float32),
        "wt": scale * jax.random.normal(ks[1], (txt_hidden, before_clf_size), jnp.float32),
        "bt": jnp.zeros((1, before_clf_size), jnp.float32),
        "wi": scale * jax.random.normal(ks[2], (img_feat_dim, before_clf_size), jnp.float32),
        "bi": jnp.zeros((1, before_clf_size), jnp.float32),
        "wc": scale * jax.random.normal(ks[3], (before_clf_size, n_classes), jnp.float32),
        "bc": scale * jax.random.normal(ks[4], (1, n_classes), jnp.float32),
    }


def text_pool(params, txt_ids, mask):
    # Synthetic early_BertClf front-end: embedding lookup + masked mean pool.
    emb = jnp.take(params["emb"], txt_ids, axis=0)              # (B, S, Ht)
    m = mask[..., None].astype(jnp.float32)                     # (B, S, 1)
    return jnp.sum(emb * m, axis=1) / jnp.maximum(jnp.sum(m, axis=1), 1.0)


def image_pool(img_nchw):
    # Synthetic early_ImageClf front-end: flatten NCHW to (B, C*H*W).
    B = img_nchw.shape[0]
    return img_nchw.reshape(B, -1).astype(jnp.float32)


# -----------------------------------------------------------------------------
# Pure-JAX reference with matching bf16 matmul operands / f32 accumulation.
# -----------------------------------------------------------------------------
def reference_forward(txt_feat, img_feat, params, *, df=True):
    def dot(a, b):
        return jnp.dot(a.astype(jnp.bfloat16), b.astype(jnp.bfloat16),
                       preferred_element_type=jnp.float32)

    txt_out = dot(txt_feat, params["wt"]) + params["bt"]
    img_out = dot(img_feat, params["wi"]) + params["bi"]
    txt_logits = dot(txt_out, params["wc"]) + params["bc"]
    img_logits = dot(img_out, params["wc"]) + params["bc"]

    def conf(lg):
        m = jnp.max(lg, axis=1, keepdims=True)
        return (m + jnp.log(jnp.sum(jnp.exp(lg - m), axis=1, keepdims=True))) / 10.0

    txt_conf = conf(txt_logits)
    img_conf = conf(img_logits)
    if df:
        fused = dot(txt_out * txt_conf + img_out * img_conf,
                    params["wc"]) + params["bc"]
    else:
        fused = 0.5 * txt_out + 0.5 * img_out
    return fused, txt_logits, img_logits, txt_conf, img_conf, txt_out, img_out


# -----------------------------------------------------------------------------
if __name__ == "__main__":
    # Small shapes consistent with the module's forward signature.
    B, S, VOCAB = 2, 8, 50
    TXT_HIDDEN = 32
    C_IMG, H_IMG, W_IMG = 4, 16, 16
    BEFORE_CLF_SIZE = 64
    N_CLASSES = 4

    key = jax.random.PRNGKey(0)
    k_txt, k_img, k_params = jax.random.split(key, 3)

    txt = jax.random.randint(k_txt, (B, S), 0, VOCAB)                      # token ids
    mask = jnp.ones((B, S), jnp.int32)                                     # attention mask
    segment = jnp.zeros((B, S), jnp.int32)                                 # unused by synthetic encoder
    img = jax.random.normal(k_img, (B, C_IMG, H_IMG, W_IMG), jnp.float32)  # NCHW

    params = init_params(
        k_params, vocab=VOCAB, txt_hidden=TXT_HIDDEN,
        img_feat_dim=C_IMG * H_IMG * W_IMG,
        before_clf_size=BEFORE_CLF_SIZE, n_classes=N_CLASSES)

    txt_feat = text_pool(params, txt, mask)    # (B, TXT_HIDDEN)
    img_feat = image_pool(img)                 # (B, C*H*W)

    # df=True branch (confidence-weighted fusion + classifier)
    outs = multimodal_early_fusion_clf(txt_feat, img_feat, params, df=True)
    outs = jax.block_until_ready(outs)
    refs = reference_forward(txt_feat, img_feat, params, df=True)
    names = ["txt_img_out", "txt_logits", "img_logits",
             "txt_conf", "img_conf", "txt_out", "img_out"]
    for name, got, exp in zip(names, outs, refs):
        assert got.shape == exp.shape, (name, got.shape, exp.shape)
        assert jnp.allclose(got, exp, atol=1e-3, rtol=1e-3), name

    # df=False branch (plain average, (B, D) output)
    outs_nf = multimodal_early_fusion_clf(txt_feat, img_feat, params, df=False)
    outs_nf = jax.block_until_ready(outs_nf)
    refs_nf = reference_forward(txt_feat, img_feat, params, df=False)
    for name, got, exp in zip(names, outs_nf, refs_nf):
        assert got.shape == exp.shape, (name, got.shape, exp.shape)
        assert jnp.allclose(got, exp, atol=1e-3, rtol=1e-3), name

    print("KERNEL_OK")
</pallas_src>

<mosaic_0001>
module attributes {stable_mosaic.version = 11 : i64} {
  func.func @_fusion_kernel(%arg0: i32, %arg1: i32, %arg2: memref<8x128xbf16, #tpu.memory_space<vmem>>, %arg3: memref<8x1024xbf16, #tpu.memory_space<vmem>>, %arg4: memref<128x128xbf16, #tpu.memory_space<vmem>>, %arg5: memref<1x128xf32, #tpu.memory_space<vmem>>, %arg6: memref<1024x128xbf16, #tpu.memory_space<vmem>>, %arg7: memref<1x128xf32, #tpu.memory_space<vmem>>, %arg8: memref<128x128xbf16, #tpu.memory_space<vmem>>, %arg9: memref<1x128xf32, #tpu.memory_space<vmem>>, %arg10: memref<8x128xf32, #tpu.memory_space<vmem>>, %arg11: memref<8x128xf32, #tpu.memory_space<vmem>>, %arg12: memref<8x128xf32, #tpu.memory_space<vmem>>, %arg13: memref<8x128xf32, #tpu.memory_space<vmem>>, %arg14: memref<8x128xf32, #tpu.memory_space<vmem>>, %arg15: memref<8x128xf32, #tpu.memory_space<vmem>>, %arg16: memref<16x128xbf16, #tpu.memory_space<vmem>>) attributes {dimension_semantics = [#tpu.dimension_semantics<parallel>, #tpu.dimension_semantics<arbitrary>], iteration_bounds = array<i64: 1, 1>, scalar_prefetch = 0 : i64, scratch_operands = 2 : i64, tpu.core_type = #tpu.core_type<tc>, window_params = [{transform_indices = @transform_0, window_bounds = array<i64: 8, 128>}, {transform_indices = @transform_1, window_bounds = array<i64: 8, 1024>}, {pipeline_mode = #tpu.pipeline_mode<synchronous>, transform_indices = @transform_2, window_bounds = array<i64: 128, 128>}, {pipeline_mode = #tpu.pipeline_mode<synchronous>, transform_indices = @transform_3, window_bounds = array<i64: 1, 128>}, {transform_indices = @transform_4, window_bounds = array<i64: 1024, 128>}, {pipeline_mode = #tpu.pipeline_mode<synchronous>, transform_indices = @transform_5, window_bounds = array<i64: 1, 128>}, {pipeline_mode = #tpu.pipeline_mode<synchronous>, transform_indices = @transform_6, window_bounds = array<i64: 128, 128>}, {pipeline_mode = #tpu.pipeline_mode<synchronous>, transform_indices = @transform_7, window_bounds = array<i64: 1, 128>}, {transform_indices = @transform_8, window_bounds = array<i64: 8, 128>}, {transform_indices = @transform_9, window_bounds = array<i64: 8, 128>}, {transform_indices = @transform_10, window_bounds = array<i64: 8, 128>}, {transform_indices = @transform_11, window_bounds = array<i64: 8, 128>}, {transform_indices = @transform_12, window_bounds = array<i64: 8, 128>}]} {
    %c0_i32 = arith.constant 0 : i32
    %0 = arith.cmpi eq, %arg1, %c0_i32 : i32
    %1 = arith.extui %0 : i1 to i32
    %c0_i32_0 = arith.constant 0 : i32
    %2 = arith.cmpi ne, %1, %c0_i32_0 : i32
    scf.if %2 {
      %cst_10 = arith.constant 0.000000e+00 : f32
      %12 = vector.broadcast %cst_10 : f32 to vector<8x128xf32>
      %c0_11 = arith.constant 0 : index
      %c0_12 = arith.constant 0 : index
      %13 = vector.load %arg15[%c0_11, %c0_12] : memref<8x128xf32, #tpu.memory_space<vmem>>, vector<8x128xf32>
      tpu.vector_store %arg15[%c0_11, %c0_12], %12 {strides = array<i32>} : memref<8x128xf32, #tpu.memory_space<vmem>>, vector<8x128xf32>,
      %c0_13 = arith.constant 0 : index
      %c0_14 = arith.constant 0 : index
      %14 = vector.load %arg2[%c0_13, %c0_14] : memref<8x128xbf16, #tpu.memory_space<vmem>>, vector<8x128xbf16>
      %c0_15 = arith.constant 0 : index
      %c0_16 = arith.constant 0 : index
      %15 = vector.load %arg4[%c0_15, %c0_16] : memref<128x128xbf16, #tpu.memory_space<vmem>>, vector<128x128xbf16>
      %cst_17 = arith.constant dense<0.000000e+00> : vector<8x128xf32>
      %16 = tpu.matmul %14, %15, %cst_17 {dimension_numbers = #tpu.dot_dimension_numbers<[1], [0], [0], [1], [0, 0, 1, 1], [], []>} : vector<8x128xbf16>, vector<128x128xbf16>, vector<8x128xf32> -> vector<8x128xf32>
      %c0_18 = arith.constant 0 : index
      %c0_19 = arith.constant 0 : index
      %17 = vector.load %arg5[%c0_18, %c0_19] : memref<1x128xf32, #tpu.memory_space<vmem>>, vector<1x128xf32>
      %18 = vector.broadcast %17 : vector<1x128xf32> to vector<8x128xf32>
      %19 = arith.addf %16, %18 : vector<8x128xf32>
      %c0_20 = arith.constant 0 : index
      %c0_21 = arith.constant 0 : index
      %20 = vector.load %arg13[%c0_20, %c0_21] : memref<8x128xf32, #tpu.memory_space<vmem>>, vector<8x128xf32>
      tpu.vector_store %arg13[%c0_20, %c0_21], %19 {strides = array<i32>} : memref<8x128xf32, #tpu.memory_space<vmem>>, vector<8x128xf32>,
      %21 = arith.truncf %19 : vector<8x128xf32> to vector<8x128xbf16>
      %c0_22 = arith.constant 0 : index
      %c0_23 = arith.constant 0 : index
      %22 = vector.load %arg16[%c0_22, %c0_23] : memref<16x128xbf16, #tpu.memory_space<vmem>>, vector<8x128xbf16>
      tpu.vector_store %arg16[%c0_22, %c0_23], %21 {strides = array<i32>} : memref<16x128xbf16, #tpu.memory_space<vmem>>, vector<8x128xbf16>,
    } else {
    }
    %c0 = arith.constant 0 : index
    %c0_1 = arith.constant 0 : index
    %3 = vector.load %arg15[%c0, %c0_1] : memref<8x128xf32, #tpu.memory_space<vmem>>, vector<8x128xf32>
    %c0_2 = arith.constant 0 : index
    %c0_3 = arith.constant 0 : index
    %4 = vector.load %arg3[%c0_2, %c0_3] : memref<8x1024xbf16, #tpu.memory_space<vmem>>, vector<8x1024xbf16>
    %c0_4 = arith.constant 0 : index
    %c0_5 = arith.constant 0 : index
    %5 = vector.load %arg6[%c0_4, %c0_5] : memref<1024x128xbf16, #tpu.memory_space<vmem>>, vector<1024x128xbf16>
    %cst = arith.constant dense<0.000000e+00> : vector<8x128xf32>
    %6 = tpu.matmul %4, %5, %cst {dimension_numbers = #tpu.dot_dimension_numbers<[1], [0], [0], [1], [0, 0, 1, 1], [], []>} : vector<8x1024xbf16>, vector<1024x128xbf16>, vector<8x128xf32> -> vector<8x128xf32>
    %7 = arith.addf %3, %6 : vector<8x128xf32>
    %c0_6 = arith.constant 0 : index
    %c0_7 = arith.constant 0 : index
    %8 = vector.load %arg15[%c0_6, %c0_7] : memref<8x128xf32, #tpu.memory_space<vmem>>, vector<8x128xf32>
    tpu.vector_store %arg15[%c0_6, %c0_7], %7 {strides = array<i32>} : memref<8x128xf32, #tpu.memory_space<vmem>>, vector<8x128xf32>,
    %c0_i32_8 = arith.constant 0 : i32
    %9 = arith.cmpi eq, %arg1, %c0_i32_8 : i32
    %10 = arith.extui %9 : i1 to i32
    %c0_i32_9 = arith.constant 0 : i32
    %11 = arith.cmpi ne, %10, %c0_i32_9 : i32
    scf.if %11 {
      %c0_10 = arith.constant 0 : index
      %c0_11 = arith.constant 0 : index
      %12 = vector.load %arg15[%c0_10, %c0_11] : memref<8x128xf32, #tpu.memory_space<vmem>>, vector<8x128xf32>
      %c0_12 = arith.constant 0 : index
      %c0_13 = arith.constant 0 : index
      %13 = vector.load %arg7[%c0_12, %c0_13] : memref<1x128xf32, #tpu.memory_space<vmem>>, vector<1x128xf32>
      %14 = vector.broadcast %13 : vector<1x128xf32> to vector<8x128xf32>
      %15 = arith.addf %12, %14 : vector<8x128xf32>
      %c0_14 = arith.constant 0 : index
      %c0_15 = arith.constant 0 : index
      %16 = vector.load %arg14[%c0_14, %c0_15] : memref<8x128xf32, #tpu.memory_space<vmem>>, vector<8x128xf32>
      tpu.vector_store %arg14[%c0_14, %c0_15], %15 {strides = array<i32>} : memref<8x128xf32, #tpu.memory_space<vmem>>, vector<8x128xf32>,
      %17 = arith.truncf %15 : vector<8x128xf32> to vector<8x128xbf16>
      %c8 = arith.constant 8 : index
      %c0_16 = arith.constant 0 : index
      %18 = vector.load %arg16[%c8, %c0_16] : memref<16x128xbf16, #tpu.memory_space<vmem>>, vector<8x128xbf16>
      tpu.vector_store %arg16[%c8, %c0_16], %17 {strides = array<i32>} : memref<16x128xbf16, #tpu.memory_space<vmem>>, vector<8x128xbf16>,
      %c0_17 = arith.constant 0 : index
      %c0_18 = arith.constant 0 : index
      %19 = vector.load %arg8[%c0_17, %c0_18] : memref<128x128xbf16, #tpu.memory_space<vmem>>, vector<128x128xbf16>
      %c0_19 = arith.constant 0 : index
      %c0_20 = arith.constant 0 : index
      %20 = vector.load %arg9[%c0_19, %c0_20] : memref<1x128xf32, #tpu.memory_space<vmem>>, vector<1x128xf32>
      %c0_21 = arith.constant 0 : index
      %c0_22 = arith.constant 0 : index
      %21 = vector.load %arg16[%c0_21, %c0_22] : memref<16x128xbf16, #tpu.memory_space<vmem>>, vector<16x128xbf16>
      %cst_23 = arith.constant dense<0.000000e+00> : vector<16x128xf32>
      %22 = tpu.matmul %21, %19, %cst_23 {dimension_numbers = #tpu.dot_dimension_numbers<[1], [0], [0], [1], [0, 0, 1, 1], [], []>} : vector<16x128xbf16>, vector<128x128xbf16>, vector<16x128xf32> -> vector<16x128xf32>
      %23 = vector.broadcast %20 : vector<1x128xf32> to vector<16x128xf32>
      %24 = arith.addf %22, %23 : vector<16x128xf32>
      %25 = vector.extract_strided_slice %24 {offsets = [0, 0], sizes = [8, 128], strides = [1, 1]} : vector<16x128xf32> to vector<8x128xf32>
      %26 = vector.extract_strided_slice %24 {offsets = [8, 0], sizes = [8, 128], strides = [1, 1]} : vector<16x128xf32> to vector<8x128xf32>
      %c0_24 = arith.constant 0 : index
      %c0_25 = arith.constant 0 : index
      %27 = vector.load %arg11[%c0_24, %c0_25] : memref<8x128xf32, #tpu.memory_space<vmem>>, vector<8x128xf32>
      tpu.vector_store %arg11[%c0_24, %c0_25], %25 {strides = array<i32>} : memref<8x128xf32, #tpu.memory_space<vmem>>, vector<8x128xf32>,
      %c0_26 = arith.constant 0 : index
      %c0_27 = arith.constant 0 : index
      %28 = vector.load %arg12[%c0_26, %c0_27] : memref<8x128xf32, #tpu.memory_space<vmem>>, vector<8x128xf32>
      tpu.vector_store %arg12[%c0_26, %c0_27], %26 {strides = array<i32>} : memref<8x128xf32, #tpu.memory_space<vmem>>, vector<8x128xf32>,
      %29 = tpu.iota {dimensions = array<i32: 1>} : vector<8x128xi32>
      %c4_i32 = arith.constant 4 : i32
      %30 = vector.broadcast %c4_i32 : i32 to vector<8x128xi32>
      %31 = arith.cmpi slt, %29, %30 : vector<8x128xi32>
      %c0_28 = arith.constant 0 : index
      %c0_29 = arith.constant 0 : index
      %32 = vector.load %arg13[%c0_28, %c0_29] : memref<8x128xf32, #tpu.memory_space<vmem>>, vector<8x128xf32>
      %cst_30 = arith.constant 0xFF800000 : f32
      %33 = vector.broadcast %cst_30 : f32 to vector<8x128xf32>
      %34 = arith.select %31, %25, %33 : vector<8x128xi1>, vector<8x128xf32>
      %cst_31 = arith.constant dense<0xFF800000> : vector<8xf32>
      %35 = vector.multi_reduction <maximumf>, %34, %cst_31 [1] : vector<8x128xf32> to vector<8xf32>
      %36 = vector.shape_cast %35 : vector<8xf32> to vector<8x1xf32>
      %37 = vector.broadcast %36 : vector<8x1xf32> to vector<8x128xf32>
      %38 = arith.subf %34, %37 : vector<8x128xf32>
      %39 = math.exp %38 : vector<8x128xf32>
      %cst_32 = arith.constant dense<0.000000e+00> : vector<8xf32>
      %40 = vector.multi_reduction <add>, %39, %cst_32 [1] : vector<8x128xf32> to vector<8xf32>
      %41 = vector.shape_cast %40 : vector<8xf32> to vector<8x1xf32>
      %42 = math.log %41 : vector<8x1xf32>
      %43 = arith.addf %36, %42 : vector<8x1xf32>
      %cst_33 = arith.constant 1.000000e+01 : f32
      %44 = vector.broadcast %cst_33 : f32 to vector<8x1xf32>
      %45 = arith.divf %43, %44 : vector<8x1xf32>
      %46 = vector.broadcast %45 : vector<8x1xf32> to vector<8x128xf32>
      %47 = arith.mulf %32, %46 : vector<8x128xf32>
      %cst_34 = arith.constant 0xFF800000 : f32
      %48 = vector.broadcast %cst_34 : f32 to vector<8x128xf32>
      %49 = arith.select %31, %26, %48 : vector<8x128xi1>, vector<8x128xf32>
      %cst_35 = arith.constant dense<0xFF800000> : vector<8xf32>
      %50 = vector.multi_reduction <maximumf>, %49, %cst_35 [1] : vector<8x128xf32> to vector<8xf32>
      %51 = vector.shape_cast %50 : vector<8xf32> to vector<8x1xf32>
      %52 = vector.broadcast %51 : vector<8x1xf32> to vector<8x128xf32>
      %53 = arith.subf %49, %52 : vector<8x128xf32>
      %54 = math.exp %53 : vector<8x128xf32>
      %cst_36 = arith.constant dense<0.000000e+00> : vector<8xf32>
      %55 = vector.multi_reduction <add>, %54, %cst_36 [1] : vector<8x128xf32> to vector<8xf32>
      %56 = vector.shape_cast %55 : vector<8xf32> to vector<8x1xf32>
      %57 = math.log %56 : vector<8x1xf32>
      %58 = arith.addf %51, %57 : vector<8x1xf32>
      %cst_37 = arith.constant 1.000000e+01 : f32
      %59 = vector.broadcast %cst_37 : f32 to vector<8x1xf32>
      %60 = arith.divf %58, %59 : vector<8x1xf32>
      %61 = vector.broadcast %60 : vector<8x1xf32> to vector<8x128xf32>
      %62 = arith.mulf %15, %61 : vector<8x128xf32>
      %63 = arith.addf %47, %62 : vector<8x128xf32>
      %64 = arith.truncf %63 : vector<8x128xf32> to vector<8x128xbf16>
      %cst_38 = arith.constant dense<0.000000e+00> : vector<8x128xf32>
      %65 = tpu.matmul %64, %19, %cst_38 {dimension_numbers = #tpu.dot_dimension_numbers<[1], [0], [0], [1], [0, 0, 1, 1], [], []>} : vector<8x128xbf16>, vector<128x128xbf16>, vector<8x128xf32> -> vector<8x128xf32>
      %66 = vector.broadcast %20 : vector<1x128xf32> to vector<8x128xf32>
      %67 = arith.addf %65, %66 : vector<8x128xf32>
      %c0_39 = arith.constant 0 : index
      %c0_40 = arith.constant 0 : index
      %68 = vector.load %arg10[%c0_39, %c0_40] : memref<8x128xf32, #tpu.memory_space<vmem>>, vector<8x128xf32>
      tpu.vector_store %arg10[%c0_39, %c0_40], %67 {strides = array<i32>} : memref<8x128xf32, #tpu.memory_space<vmem>>, vector<8x128xf32>,
    } else {
    }
    return
  }
  func.func @transform_0(%arg0: i32, %arg1: i32) -> (i32, i32) {
    %c0_i32 = arith.constant 0 : i32
    %c0_i32_0 = arith.constant 0 : i32
    return %arg0, %c0_i32 : i32, i32
  }
  func.func @transform_1(%arg0: i32, %arg1: i32) -> (i32, i32) {
    %c0_i32 = arith.constant 0 : i32
    return %arg0, %arg1 : i32, i32
  }
  func.func @transform_2(%arg0: i32, %arg1: i32) -> (i32, i32) {
    %c0_i32 = arith.constant 0 : i32
    %c0_i32_0 = arith.constant 0 : i32
    %c0_i32_1 = arith.constant 0 : i32
    return %c0_i32, %c0_i32_0 : i32, i32
  }
  func.func @transform_3(%arg0: i32, %arg1: i32) -> (i32, i32) {
    %c0_i32 = arith.constant 0 : i32
    %c0_i32_0 = arith.constant 0 : i32
    %c0_i32_1 = arith.constant 0 : i32
    return %c0_i32, %c0_i32_0 : i32, i32
  }
  func.func @transform_4(%arg0: i32, %arg1: i32) -> (i32, i32) {
    %c0_i32 = arith.constant 0 : i32
    %c0_i32_0 = arith.constant 0 : i32
    return %arg1, %c0_i32 : i32, i32
  }
  func.func @transform_5(%arg0: i32, %arg1: i32) -> (i32, i32) {
    %c0_i32 = arith.constant 0 : i32
    %c0_i32_0 = arith.constant 0 : i32
    %c0_i32_1 = arith.constant 0 : i32
    return %c0_i32, %c0_i32_0 : i32, i32
  }
  func.func @transform_6(%arg0: i32, %arg1: i32) -> (i32, i32) {
    %c0_i32 = arith.constant 0 : i32
    %c0_i32_0 = arith.constant 0 : i32
    %c0_i32_1 = arith.constant 0 : i32
    return %c0_i32, %c0_i32_0 : i32, i32
  }
  func.func @transform_7(%arg0: i32, %arg1: i32) -> (i32, i32) {
    %c0_i32 = arith.constant 0 : i32
    %c0_i32_0 = arith.constant 0 : i32
    %c0_i32_1 = arith.constant 0 : i32
    return %c0_i32, %c0_i32_0 : i32, i32
  }
  func.func @transform_8(%arg0: i32, %arg1: i32) -> (i32, i32) {
    %c0_i32 = arith.constant 0 : i32
    %c0_i32_0 = arith.constant 0 : i32
    return %arg0, %c0_i32 : i32, i32
  }
  func.func @transform_9(%arg0: i32, %arg1: i32) -> (i32, i32) {
    %c0_i32 = arith.constant 0 : i32
    %c0_i32_0 = arith.constant 0 : i32
    return %arg0, %c0_i32 : i32, i32
  }
  func.func @transform_10(%arg0: i32, %arg1: i32) -> (i32, i32) {
    %c0_i32 = arith.constant 0 : i32
    %c0_i32_0 = arith.constant 0 : i32
    return %arg0, %c0_i32 : i32, i32
  }
  func.func @transform_11(%arg0: i32, %arg1: i32) -> (i32, i32) {
    %c0_i32 = arith.constant 0 : i32
    %c0_i32_0 = arith.constant 0 : i32
    return %arg0, %c0_i32 : i32, i32
  }
  func.func @transform_12(%arg0: i32, %arg1: i32) -> (i32, i32) {
    %c0_i32 = arith.constant 0 : i32
    %c0_i32_0 = arith.constant 0 : i32
    return %arg0, %c0_i32 : i32, i32
  }
}

</mosaic_0001>

<bundles_post_ra>
// kernel: tpu_custom_call.1
= control target key start
LH: loop header
LB: loop body
LE: loop exit
PB: predicated region body
PF: predicated region fallthrough
CT: control target
= control target key end

     0   :  { %18 = vsyncpa [#allocation5], 0  ;;  %s1905_s0 = inlined_call_operand.hbm [shape: bf16[8,128], index: 0, kind: input, shape index: {}]   ;;  %s1906_s1 = inlined_call_operand.hbm [shape: bf16[8,1024], index: 1, kind: input, shape index: {}]   ;;  %s1907_s2 = inlined_call_operand.hbm [shape: bf16[128,128], index: 2, kind: input, shape index: {}]   ;;  %s1908_s3 = inlined_call_operand.vmem [shape: f32[1,128], index: 3, kind: input, shape index: {}]   ;;  %s1909_s4 = inlined_call_operand.hbm [shape: bf16[1024,128], index: 4, kind: input, shape index: {}]   ;;  %s1910_s5 = inlined_call_operand.vmem [shape: f32[1,128], index: 5, kind: input, shape index: {}]   ;;  %s1911_s6 = inlined_call_operand.hbm [shape: bf16[128,128], index: 6, kind: input, shape index: {}]   ;;  %s1912_s7 = inlined_call_operand.vmem [shape: f32[1,128], index: 7, kind: input, shape index: {}]   ;;  %s1913_s8 = inlined_call_operand.hbm [shape: f32[8,128], index: 8, kind: output, shape index: {0}]   ;;  %s1914_s9 = inlined_call_operand.hbm [shape: f32[8,128], index: 9, kind: output, shape index: {1}]   ;;  %s1915_s10 = inlined_call_operand.hbm [shape: f32[8,128], index: 10, kind: output, shape index: {2}]   ;;  %s1916_s11 = inlined_call_operand.hbm [shape: f32[8,128], index: 11, kind: output, shape index: {3}]   ;;  %s1917_s12 = inlined_call_operand.hbm [shape: f32[8,128], index: 12, kind: output, shape index: {4}]  }
   0x1   :  { %19 = vsyncpa [#allocation8], 0 }
   0x2   :  { %20 = vsyncpa [#allocation11], 0 }
   0x3   :  { %21 = vsyncpa [#allocation6], 0 }
   0x4   :  { %22 = vsyncpa [#allocation15], 0  ;;  %s40_s23 = sshll.u32 %s1906_s1, 4  ;;  %s41_s23 = int_to_ptr.hbm [resolvable:$true] %s40_s23 }
   0x5   :  { %23 = vsyncpa [#allocation18], 0  ;;  %s1773_s24 = smov [#allocation7]   ;;  %s65_s28 = sshll.u32 %s1909_s4, 4  ;;  %s66_s28 = int_to_ptr.hbm [resolvable:$true] %s65_s28 }
   0x6   :  { %s42_s25 = sshll.u32 %s1773_s24, 4  ;;  %s1774_s29 = smov [#allocation10]   ;;  %s43_s25 = int_to_ptr.vmem [resolvable:$true] %s42_s25 }
   0x7   :  { %45 = dma.hbm_to_vmem [thread:$0]  %s41_s23, 512, %s43_s25, [#allocation8]  }
   0x8   :  { %s67_s30 = sshll.u32 %s1774_s29, 4  ;;  %s29_s15 = sshll.u32 %s1905_s0, 4  ;;  %s68_s30 = int_to_ptr.vmem [resolvable:$true] %s67_s30  ;;  %s30_s15 = int_to_ptr.hbm [resolvable:$true] %s29_s15 }
   0x9   :  { %s1775_s1 = smov 64   ;;  %s1776_s16 = smov 4  }
   0xa   :  { %73 = dma.hbm_to_vmem [thread:$0]  %s66_s28, 8192, %s68_s30, [#allocation11], %s1775_s1, %s1775_s1, %s1776_s16  }
   0xb   :  { %s50_s19 = sshll.u32 %s1907_s2, 4  ;;  %s1777_s20 = smov [#allocation4]   ;;  %s51_s19 = int_to_ptr.hbm [resolvable:$true] %s50_s19 }
   0xc   :  { %s31_s21 = sshll.u32 %s1777_s20, 4  ;;  %s1778_s4 = smov [#allocation9]   ;;  %s32_s21 = int_to_ptr.vmem [resolvable:$true] %s31_s21 }
   0xd   :  { %34 = dma.hbm_to_vmem [thread:$0]  %s30_s15, 64, %s32_s21, [#allocation5]  }
   0xe   :  { %s52_s22 = sshll.u32 %s1778_s4, 4  ;;  %s80_s0 = sshll.u32 %s1911_s6, 4  ;;  %s53_s22 = int_to_ptr.vmem [resolvable:$true] %s52_s22  ;;  %s81_s0 = int_to_ptr.hbm [resolvable:$true] %s80_s0 }
   0xf   :  { %58 = dma.hbm_to_vmem [thread:$0]  %s51_s19, 1024, %s53_s22, [#allocation8], %s1775_s1, %s1775_s1, %s1776_s16  }
  0x10   :  { %s1779_s25 = smov [#allocation12]  }
  0x11   :  { %s82_s26 = sshll.u32 %s1779_s25, 4  ;;  %s83_s26 = int_to_ptr.vmem [resolvable:$true] %s82_s26 }
  0x12   :  { %88 = dma.hbm_to_vmem [thread:$0]  %s81_s0, 1024, %s83_s26, [#allocation11], %s1775_s1, %s1775_s1, %s1776_s16  }
  0x13   :  { %1761 = dma.done.wait [#allocation5], 64  }
  0x14   :  { %1762 = vsyncadd [#allocation5], 4294967232 }
  0x15   :  { %1763 = dma.done.wait [#allocation8], 1536  }
  0x16   :  { %1764 = vsyncadd [#allocation8], 4294965760 }
  0x17   :  { %1765 = dma.done.wait [#allocation11], 9216  }
  0x18   :  { %1766 = vsyncadd [#allocation11], 4294958080  ;;  %v1421_v0 = vld [vmem:[#allocation9 + $0x38] sm:$0xff]  ;;  %v1420_v3 = vld [vmem:[#allocation9 + $0x30] sm:$0xff]  ;;  %s1027_s30 = sshll.u32 %s1914_s9, 4  ;;  %s1781_s13 = smov [#allocation14]   ;;  %s1028_s30 = int_to_ptr.hbm [resolvable:$true] %s1027_s30 }
  0x19   :  { %v1437_v1 = vld [vmem:[#allocation10 + $0x78] sm:$0xff]  ;;  %185 = vmatpush.bf16.msra.mxu0 %v1421_v0  ;;  %v1436_v5 = vld [vmem:[#allocation10 + $0x70] sm:$0xff]  ;;  %v1419_v8 = vld [vmem:[#allocation9 + $0x28] sm:$0xff]  ;;  %s1025_s14 = sshll.u32 %s1781_s13, 4  ;;  %s1782_s15 = smov [#allocation17]   ;;  %s1026_s14 = int_to_ptr.vmem [resolvable:$true] %s1025_s14 }
  0x1a   :  { %v1445_v2 = vld [vmem:[#allocation10 + $0xb8] sm:$0xff]  ;;  %759 = vmatpush.bf16.msra.mxu2 %v1437_v1  ;;  %v1444_v6 = vld [vmem:[#allocation10 + $0xb0] sm:$0xff]  ;;  %v1435_v9 = vld [vmem:[#allocation10 + $0x68] sm:$0xff]  ;;  %s1047_s1 = sshll.u32 %s1782_s15, 4  ;;  %s1049_s18 = sshll.u32 %s1916_s11, 4  ;;  %s1048_s1 = int_to_ptr.vmem [resolvable:$true] %s1047_s1  ;;  %s1050_s18 = int_to_ptr.hbm [resolvable:$true] %s1049_s18 }
  0x1b   :  { %v1429_v4 = vld [vmem:[#allocation10 + $0x38] sm:$0xff]  ;;  %772 = vmatpush.bf16.msra.mxu3 %v1445_v2  ;;  %v1428_v7 = vld [vmem:[#allocation10 + $0x30] sm:$0xff]  ;;  %v1443_v10 = vld [vmem:[#allocation10 + $0xa8] sm:$0xff]  ;;  %s1783_s19 = smov [#allocation16]   ;;  %s1038_s9 = sshll.u32 %s1915_s10, 4  ;;  %s1039_s9 = int_to_ptr.hbm [resolvable:$true] %s1038_s9 }
  0x1c   :  { %746 = vmatpush.bf16.msra.mxu1 %v1429_v4  ;;  %v1427_v11 = vld [vmem:[#allocation10 + $0x28] sm:$0xff]  ;;  %v1418_v12 = vld [vmem:[#allocation9 + $0x20] sm:$0xff]  ;;  %v1417_v16 = vld [vmem:[#allocation9 + $0x18] sm:$0xff]  ;;  %s1036_s20 = sshll.u32 %s1783_s19, 4  ;;  %s1060_s24 = sshll.u32 %s1917_s12, 4  ;;  %s1037_s20 = int_to_ptr.vmem [resolvable:$true] %s1036_s20  ;;  %s1061_s24 = int_to_ptr.hbm [resolvable:$true] %s1060_s24 }
  0x1d   :  { %186 = vmatpush.bf16.msra.mxu0 %v1420_v3  ;;  %v1434_v13 = vld [vmem:[#allocation10 + $0x60] sm:$0xff]  ;;  %v1433_v17 = vld [vmem:[#allocation10 + $0x58] sm:$0xff]  ;;  %v1416_v20 = vld [vmem:[#allocation9 + $0x10] sm:$0xff]  ;;  %s1784_s0 = smov [#allocation19]   ;;  %s1785_s11 = smov [#allocation13]  }
  0x1e   :  { %760 = vmatpush.bf16.msra.mxu2 %v1436_v5  ;;  %v1442_v14 = vld [vmem:[#allocation10 + $0xa0] sm:$0xff]  ;;  %v1441_v18 = vld [vmem:[#allocation10 + $0x98] sm:$0xff]  ;;  %v1432_v21 = vld [vmem:[#allocation10 + $0x50] sm:$0xff]  ;;  %s1058_s25 = sshll.u32 %s1784_s0, 4  ;;  %s1014_s26 = sshll.u32 %s1785_s11, 4  ;;  %s1059_s25 = int_to_ptr.vmem [resolvable:$true] %s1058_s25  ;;  %s1015_s26 = int_to_ptr.vmem [resolvable:$true] %s1014_s26 }
  0x1f   :  { %773 = vmatpush.bf16.msra.mxu3 %v1444_v6  ;;  %v1426_v15 = vld [vmem:[#allocation10 + $0x20] sm:$0xff]  ;;  %v1425_v19 = vld [vmem:[#allocation10 + $0x18] sm:$0xff]  ;;  %v1440_v22 = vld [vmem:[#allocation10 + $0x90] sm:$0xff] }
  0x20   :  { %747 = vmatpush.bf16.msra.mxu1 %v1428_v7  ;;  %v1424_v23 = vld [vmem:[#allocation10 + $0x10] sm:$0xff]  ;;  %v1415_v24 = vld [vmem:[#allocation9 + $0x8] sm:$0xff]  ;;  %v202_v28 = vld [vmem:[#allocation7] sm:$0xff] }
  0x21   :  { %187 = vmatpush.bf16.msra.mxu0 %v1419_v8  ;;  %v1431_v25 = vld [vmem:[#allocation10 + $0x48] sm:$0xff]  ;;  %v1414_v30 = vld [vmem:[#allocation9] sm:$0xff]  ;;  %v1453_v31 = vld [vmem:[#allocation10 + $0xf8] sm:$0xff]  ;;  %v339_v33 = vunpack.c.h.b16 %v202_v28  ;;  %v338_v39 = vunpack.c.l.b16 %v202_v28 }
  0x22   :  { %761 = vmatpush.bf16.msra.mxu2 %v1435_v9  ;;  %v1439_v26 = vld [vmem:[#allocation10 + $0x88] sm:$0xff]  ;;  %v1430_v32 = vld [vmem:[#allocation10 + $0x40] sm:$0xff]  ;;  %v1469_v34 = vld [vmem:[#allocation10 + $0x178] sm:$0xff] }
  0x23   :  { %774 = vmatpush.bf16.msra.mxu3 %v1443_v10  ;;  %v1423_v27 = vld [vmem:[#allocation10 + $0x8] sm:$0xff]  ;;  %v1438_v35 = vld [vmem:[#allocation10 + $0x80] sm:$0xff]  ;;  %v1477_v37 = vld [vmem:[#allocation10 + $0x1b8] sm:$0xff]  ;;  %v347_v43 = vpack.c.b16 %v339_v33, %v339_v33  ;;  %v346_v47 = vpack.c.b16 %v338_v39, %v338_v39 }
  0x24   :  { %748 = vmatpush.bf16.msra.mxu1 %v1427_v11  ;;  %v1866_v29 = vld [vmem:[#allocation7 + $0x8] sm:$0xff]  ;;  %v1422_v38 = vld [vmem:[#allocation10] sm:$0xff]  ;;  %v1461_v40 = vld [vmem:[#allocation10 + $0x138] sm:$0xff] }
  0x25   :  { %188 = vmatpush.bf16.msra.mxu0 %v1418_v12  ;;  %v340_v36 = vunpack.c.l.b16 %v1866_v29  ;;  %v1452_v41 = vld [vmem:[#allocation10 + $0xf0] sm:$0xff]  ;;  %v116_v42 = vld [vmem:[#allocation4] sm:$0xf]  ;;  %v1451_v49 = vld [vmem:[#allocation10 + $0xe8] sm:$0xff]  ;;  %v341_v6 = vunpack.c.h.b16 %v1866_v29 }
  0x26   :  { %762 = vmatpush.bf16.msra.mxu2 %v1434_v13  ;;  %v1468_v44 = vld [vmem:[#allocation10 + $0x170] sm:$0xff]  ;;  %v1467_v50 = vld [vmem:[#allocation10 + $0x168] sm:$0xff]  ;;  %v1450_v53 = vld [vmem:[#allocation10 + $0xe0] sm:$0xff] }
  0x27   :  { %775 = vmatpush.bf16.msra.mxu3 %v1442_v14  ;;  %v348_v45 = vpack.c.b16 %v340_v36, %v340_v36  ;;  %v1476_v46 = vld [vmem:[#allocation10 + $0x1b0] sm:$0xff]  ;;  %v1475_v51 = vld [vmem:[#allocation10 + $0x1a8] sm:$0xff]  ;;  %v1466_v54 = vld [vmem:[#allocation10 + $0x160] sm:$0xff] }
  0x28   :  { %749 = vmatpush.bf16.msra.mxu1 %v1426_v15  ;;  %v1460_v48 = vld [vmem:[#allocation10 + $0x130] sm:$0xff]  ;;  %v1459_v52 = vld [vmem:[#allocation10 + $0x128] sm:$0xff]  ;;  %v1474_v55 = vld [vmem:[#allocation10 + $0x1a0] sm:$0xff]  ;;  %v349_v15 = vpack.c.b16 %v341_v6, %v341_v6 }
  0x29   :  { %189 = vmatpush.bf16.msra.mxu0 %v1417_v16  ;;  %v1458_v56 = vld [vmem:[#allocation10 + $0x120] sm:$0xff]  ;;  %v1449_v57 = vld [vmem:[#allocation10 + $0xd8] sm:$0xff]  ;;  %v1448_v61 = vld [vmem:[#allocation10 + $0xd0] sm:$0xff] }
  0x2a   :  { %763 = vmatpush.bf16.msra.mxu2 %v1433_v17  ;;  %v1465_v58 = vld [vmem:[#allocation10 + $0x158] sm:$0xff]  ;;  %v1464_v62 = vld [vmem:[#allocation10 + $0x150] sm:$0xff]  ;;  %v1447_v1 = vld [vmem:[#allocation10 + $0xc8] sm:$0xff] }
  0x2b   :  { %776 = vmatpush.bf16.msra.mxu3 %v1441_v18  ;;  %v1473_v59 = vld [vmem:[#allocation10 + $0x198] sm:$0xff]  ;;  %v1472_v63 = vld [vmem:[#allocation10 + $0x190] sm:$0xff]  ;;  %v1463_v2 = vld [vmem:[#allocation10 + $0x148] sm:$0xff] }
  0x2c   :  { %750 = vmatpush.bf16.msra.mxu1 %v1425_v19  ;;  %v1457_v60 = vld [vmem:[#allocation10 + $0x118] sm:$0xff]  ;;  %v1456_v0 = vld [vmem:[#allocation10 + $0x110] sm:$0xff]  ;;  %v1471_v4 = vld [vmem:[#allocation10 + $0x188] sm:$0xff] }
  0x2d   :  { %190 = vmatpush.bf16.msra.mxu0 %v1416_v20  ;;  %v204_v3 = vld [vmem:[#allocation7 + $0x10] sm:$0xff]  ;;  %v205_v5 = vld [vmem:[#allocation7 + $0x18] sm:$0xff]  ;;  %v1455_v7 = vld [vmem:[#allocation10 + $0x108] sm:$0xff] }
  0x2e   :  { %764 = vmatpush.bf16.msra.mxu2 %v1432_v21  ;;  %v1446_v8 = vld [vmem:[#allocation10 + $0xc0] sm:$0xff]  ;;  %v343_v9 = vunpack.c.h.b16 %v204_v3  ;;  %v1485_v10 = vld [vmem:[#allocation10 + $0x1f8] sm:$0xff]  ;;  %v344_v12 = vunpack.c.l.b16 %v205_v5  ;;  %v342_v14 = vunpack.c.l.b16 %v204_v3  ;;  %v1484_v18 = vld [vmem:[#allocation10 + $0x1f0] sm:$0xff] }
  0x2f   :  { %777 = vmatpush.bf16.msra.mxu3 %v1440_v22  ;;  %v1462_v11 = vld [vmem:[#allocation10 + $0x140] sm:$0xff]  ;;  %v1483_v21 = vld [vmem:[#allocation10 + $0x1e8] sm:$0xff]  ;;  %v1508_v29 = vld [vmem:[%s1908_s3] ss:$0 sm:$0xff]  ;;  %s1016_s3 = sshll.u32 %s1913_s8, 4  ;;  %s1017_s3 = int_to_ptr.hbm [resolvable:$true] %s1016_s3 }
  0x30   :  { %751 = vmatpush.bf16.msra.mxu1 %v1424_v23  ;;  %v1470_v13 = vld [vmem:[#allocation10 + $0x180] sm:$0xff]  ;;  %v351_v17 = vpack.c.b16 %v343_v9, %v343_v9  ;;  %v352_v19 = vpack.c.b16 %v344_v12, %v344_v12  ;;  %v350_v20 = vpack.c.b16 %v342_v14, %v342_v14  ;;  %v1481_v23 = vld [vmem:[#allocation10 + $0x1d8] sm:$0xff]  ;;  %v1491_v39 = vld [vmem:[#allocation12 + $0x28] sm:$0xff] }
  0x31   :  { %191 = vmatpush.bf16.msra.mxu0 %v1415_v24  ;;  %v1454_v16 = vld [vmem:[#allocation10 + $0x100] sm:$0xff]  ;;  %v1480_v24 = vld [vmem:[#allocation10 + $0x1d0] sm:$0xff] }
  0x32   :  { %765 = vmatpush.bf16.msra.mxu2 %v1431_v25  ;;  %v1482_v22 = vld [vmem:[#allocation10 + $0x1e0] sm:$0xff]  ;;  %v1479_v25 = vld [vmem:[#allocation10 + $0x1c8] sm:$0xff] }
  0x33   :  { %778 = vmatpush.bf16.msra.mxu3 %v1439_v26  ;;  %v345_v26 = vunpack.c.h.b16 %v205_v5  ;;  %v956_v5 = vlaneseq }
  0x34   :  { %752 = vmatpush.bf16.msra.mxu1 %v1423_v27  ;;  %v1478_v27 = vld [vmem:[#allocation10 + $0x1c0] sm:$0xff] }
  0x35   :  { %192 = vmatpush.bf16.msra.mxu0 %v1414_v30  ;;  %v353_v28 = vpack.c.b16 %v345_v26, %v345_v26  ;;  %v957_v6 = vand.u32 127, %v956_v5 }
  0x36   :  { %766 = vmatpush.bf16.msra.mxu2 %v1430_v32 }
  0x37   :  { %779 = vmatpush.bf16.msra.mxu3 %v1438_v35  ;;  %v1492_v35 = vld [vmem:[#allocation12 + $0x30] sm:$0xff]  ;;  %vm958_vm0 = vcmp.lt.s32.totalorder %v957_v6, 4 }
  0x38   :  { %753 = vmatpush.bf16.msra.mxu1 %v1422_v38  ;;  %193 = vmatmul.bf16.vlgmr.msra.gmra.mxu0 %v116_v42 }
  0x39   :  { %785 = vmatpush.bf16.msrb.mxu0 %v1453_v31  ;;  %767 = vmatmul.bf16.vlgmr.msra.gmra.mxu2 %v347_v43 }
  0x3a   :  { %811 = vmatpush.bf16.msrb.mxu2 %v1469_v34  ;;  %780 = vmatmul.bf16.vlgmr.msra.gmra.mxu3 %v348_v45  ;;  %v1493_v34 = vld [vmem:[#allocation12 + $0x38] sm:$0xff] }
  0x3b   :  { %824 = vmatpush.bf16.msrb.mxu3 %v1477_v37  ;;  %754 = vmatmul.bf16.vlgmr.msra.gmra.mxu1 %v346_v47 }
  0x3c   :  { %798 = vmatpush.bf16.msrb.mxu1 %v1461_v40 }
  0x3d   :  { %786 = vmatpush.bf16.msrb.mxu0 %v1452_v41  ;;  %v1490_v41 = vld [vmem:[#allocation12 + $0x20] sm:$0xff] }
  0x3e   :  { %812 = vmatpush.bf16.msrb.mxu2 %v1468_v44  ;;  %v1489_v44 = vld [vmem:[#allocation12 + $0x18] sm:$0xff] }
  0x3f   :  { %825 = vmatpush.bf16.msrb.mxu3 %v1476_v46  ;;  %v1488_v46 = vld [vmem:[#allocation12 + $0x10] sm:$0xff] }
  0x40   :  { %799 = vmatpush.bf16.msrb.mxu1 %v1460_v48  ;;  %v1487_v48 = vld [vmem:[#allocation12 + $0x8] sm:$0xff] }
  0x41   :  { %787 = vmatpush.bf16.msrb.mxu0 %v1451_v49  ;;  %v1486_v49 = vld [vmem:[#allocation12] sm:$0xff] }
  0x42   :  { %813 = vmatpush.bf16.msrb.mxu2 %v1467_v50 }
  0x43   :  { %826 = vmatpush.bf16.msrb.mxu3 %v1475_v51 }
  0x44   :  { %800 = vmatpush.bf16.msrb.mxu1 %v1459_v52 }
  0x45   :  { %788 = vmatpush.bf16.msrb.mxu0 %v1450_v53 }
  0x46   :  { %814 = vmatpush.bf16.msrb.mxu2 %v1466_v54 }
  0x47   :  { %827 = vmatpush.bf16.msrb.mxu3 %v1474_v55 }
  0x48   :  { %801 = vmatpush.bf16.msrb.mxu1 %v1458_v56 }
  0x49   :  { %789 = vmatpush.bf16.msrb.mxu0 %v1449_v57 }
  0x4a   :  { %815 = vmatpush.bf16.msrb.mxu2 %v1465_v58 }
  0x4b   :  { %828 = vmatpush.bf16.msrb.mxu3 %v1473_v59 }
  0x4c   :  { %802 = vmatpush.bf16.msrb.mxu1 %v1457_v60 }
  0x4d   :  { %790 = vmatpush.bf16.msrb.mxu0 %v1448_v61 }
  0x4e   :  { %816 = vmatpush.bf16.msrb.mxu2 %v1464_v62  ;;  %v1509_v62 = vld [vmem:[%s1910_s5] ss:$0 sm:$0xff] }
  0x4f   :  { %829 = vmatpush.bf16.msrb.mxu3 %v1472_v63 }
  0x50   :  { %803 = vmatpush.bf16.msrb.mxu1 %v1456_v0 }
  0x51   :  { %791 = vmatpush.bf16.msrb.mxu0 %v1447_v1 }
  0x52   :  { %817 = vmatpush.bf16.msrb.mxu2 %v1463_v2 }
  0x53   :  { %830 = vmatpush.bf16.msrb.mxu3 %v1471_v4 }
  0x54   :  { %804 = vmatpush.bf16.msrb.mxu1 %v1455_v7  ;;  %v1884_v7 = vld [vmem:[%s1912_s7] ss:$0 sm:$0xff] }
  0x55   :  { %792 = vmatpush.bf16.msrb.mxu0 %v1446_v8 }
  0x56   :  { %818 = vmatpush.bf16.msrb.mxu2 %v1462_v11 }
  0x57   :  { %831 = vmatpush.bf16.msrb.mxu3 %v1470_v13 }
  0x58   :  { %793 = vmatmul.bf16.vlgmr.msrb.gmra.mxu0 %v349_v15  ;;  %805 = vmatpush.bf16.msrb.mxu1 %v1454_v16 }
  0x59   :  { %837 = vmatpush.bf16.msra.mxu0 %v1485_v10  ;;  %819 = vmatmul.bf16.vlgmr.msrb.gmra.mxu2 %v351_v17 }
  0x5a   :  { %832 = vmatmul.bf16.vlgmr.msrb.gmra.mxu3 %v352_v19  ;;  %995 = vmatpush.bf16.msra.mxu2 %v1493_v34 }
  0x5b   :  { %806 = vmatmul.bf16.vlgmr.msrb.gmra.mxu1 %v350_v20 }
  0x5c   :  { %940 = vmatpush.bf16.msra.mxu1 %v1493_v34 }
  0x5d   :  { %838 = vmatpush.bf16.msra.mxu0 %v1484_v18 }
  0x5e   :  { %996 = vmatpush.bf16.msra.mxu2 %v1492_v35 }
  0x60   :  { %941 = vmatpush.bf16.msra.mxu1 %v1492_v35 }
  0x61   :  { %839 = vmatpush.bf16.msra.mxu0 %v1483_v21 }
  0x62   :  { %997 = vmatpush.bf16.msra.mxu2 %v1491_v39 }
  0x64   :  { %942 = vmatpush.bf16.msra.mxu1 %v1491_v39 }
  0x65   :  { %840 = vmatpush.bf16.msra.mxu0 %v1482_v22  ;;  %v1780_v22 = vmov 10.0  }
  0x66   :  { %998 = vmatpush.bf16.msra.mxu2 %v1490_v41 }
  0x68   :  { %943 = vmatpush.bf16.msra.mxu1 %v1490_v41 }
  0x69   :  { %841 = vmatpush.bf16.msra.mxu0 %v1481_v23 }
  0x6a   :  { %999 = vmatpush.bf16.msra.mxu2 %v1489_v44 }
  0x6c   :  { %944 = vmatpush.bf16.msra.mxu1 %v1489_v44 }
  0x6d   :  { %842 = vmatpush.bf16.msra.mxu0 %v1480_v24 }
  0x6e   :  { %1000 = vmatpush.bf16.msra.mxu2 %v1488_v46 }
  0x70   :  { %945 = vmatpush.bf16.msra.mxu1 %v1488_v46 }
  0x71   :  { %843 = vmatpush.bf16.msra.mxu0 %v1479_v25 }
  0x72   :  { %1001 = vmatpush.bf16.msra.mxu2 %v1487_v48 }
  0x74   :  { %946 = vmatpush.bf16.msra.mxu1 %v1487_v48 }
  0x75   :  { %844 = vmatpush.bf16.msra.mxu0 %v1478_v27 }
  0x76   :  { %1002 = vmatpush.bf16.msra.mxu2 %v1486_v49 }
  0x78   :  { %845 = vmatmul.bf16.vlgmr.msra.gmra.mxu0 %v353_v28  ;;  %947 = vmatpush.bf16.msra.mxu1 %v1486_v49 }
  0xb5   :  { %v194_v30 = vpop.f32.mrf.mxu0 }
  0xb6   :  { %v1873_v31 = vadd.f32 %v1508_v29, %v194_v30 }
  0xb8   :  { %198 = vst [vmem:[#allocation17] sm:$0xff] %v1873_v31  ;;  %v199_v32 = vpack.c.bf16 %v1873_v31, %v1873_v31  ;;  %v755_v33 = vpop.f32.mrf.mxu1 }
  0xb9   :  { %1052 = dma.vmem_to_hbm [thread:$0]  %s1048_s1, 128, %s1050_s18, [#allocation18]  }
  0xba   :  { %200 = vst [vmem:[#allocation3] sm:$0xf] %v199_v32 }
  0xbc   :  { %v768_v36 = vpop.f32.mrf.mxu2 }
  0xbd   :  { %v196_v37 = vpop.f32.mrf.mxu0  ;;  %v781_v38 = vpop.f32.mrf.mxu3  ;;  %v769_v51 = vadd.f32 %v768_v36, %v755_v33 }
  0xbf   :  { %v782_v55 = vadd.f32 %v781_v38, %v769_v51 }
  0xc0   :  { %v757_v40 = vpop.f32.mrf.mxu1 }
  0xc4   :  { %v770_v42 = vpop.f32.mrf.mxu2 }
  0xc5   :  { %v783_v43 = vpop.f32.mrf.mxu3 }
  0xd5   :  { %v794_v45 = vpop.f32.mrf.mxu0 }
  0xd6   :  { %v795_v57 = vadd.f32 %v794_v45, %v782_v55 }
  0xd8   :  { %v807_v47 = vpop.f32.mrf.mxu1 }
  0xd9   :  { %v808_v59 = vadd.f32 %v807_v47, %v795_v57 }
  0xdc   :  { %v820_v50 = vpop.f32.mrf.mxu2 }
  0xdd   :  { %v796_v52 = vpop.f32.mrf.mxu0  ;;  %v833_v53 = vpop.f32.mrf.mxu3  ;;  %v821_v60 = vadd.f32 %v820_v50, %v808_v59 }
  0xdf   :  { %v834_v61 = vadd.f32 %v833_v53, %v821_v60 }
  0xe0   :  { %v809_v54 = vpop.f32.mrf.mxu1 }
  0xe4   :  { %v822_v56 = vpop.f32.mrf.mxu2 }
  0xe5   :  { %v835_v58 = vpop.f32.mrf.mxu3 }
  0xf5   :  { %v846_v63 = vpop.f32.mrf.mxu0 }
  0xf6   :  { %v847_v0 = vadd.f32 %v846_v63, %v834_v61 }
  0xf8   :  { %v860_v1 = vadd.f32 %v1509_v62, %v847_v0 }
  0xfa   :  { %v862_v2 = vpack.c.bf16 %v860_v1, %v860_v1  ;;  %861 = vst [vmem:[#allocation19] sm:$0xff] %v860_v1 }
  0xfb   :  { %1063 = dma.vmem_to_hbm [thread:$0]  %s1059_s25, 128, %s1061_s24, [#allocation18]  }
  0xfc   :  { %863 = vst [vmem:[#allocation3 + $0x4] sm:$0xf] %v862_v2 }
  0xfd   :  { %v848_v3 = vpop.f32.mrf.mxu0 }
 0x103   :  { %v1494_v4 = vld [vmem:[#allocation3] sm:$0xff] }
 0x104   :  { %948 = vmatmul.bf16.vlgmr.msra.gmra.mxu1 %v1494_v4 }
 0x181   :  { %v949_v8 = vpop.f32.mrf.mxu1 }
 0x182   :  { %v950_v9 = vadd.f32 %v1884_v7, %v949_v8 }
 0x184   :  { %954 = vst [vmem:[#allocation14] sm:$0xff] %v950_v9  ;;  %v960_v10 = vsel %vm958_vm0, %v950_v9, -inf }
 0x185   :  { %961 = vmax.xlane.f32.xlu0 %v960_v10  ;;  %1030 = dma.vmem_to_hbm [thread:$0]  %s1026_s14, 128, %s1028_s30, [#allocation15]  }
 0x189   :  { %v951_v11 = vpop.f32.mrf.mxu1 }
 0x18a   :  { %v952_v12 = vadd.f32 %v1884_v7, %v951_v11 }
 0x18c   :  { %955 = vst [vmem:[#allocation16] sm:$0xff] %v952_v12  ;;  %v980_v13 = vsel %vm958_vm0, %v952_v12, -inf }
 0x18d   :  { %981 = vmax.xlane.f32.xlu0 %v980_v13  ;;  %1041 = dma.vmem_to_hbm [thread:$0]  %s1037_s20, 128, %s1039_s9, [#allocation15]  }
 0x1f8   :  { %v962_v14 = vpop.xlane.xlu0 %961 }
 0x1f9   :  { %v963_v15 = vsub.f32 %v960_v10, %v962_v14 }
 0x1fb   :  { %v964_v16 = vmul.f32 1.442695, %v963_v15 }
 0x1fd   :  { %1511 = vpow2.f32 %v964_v16 }
 0x200   :  { %v982_v17 = vpop.xlane.xlu0 %981 }
 0x201   :  { %v983_v18 = vsub.f32 %v980_v13, %v982_v17 }
 0x203   :  { %v1512_v19 = vpop.eup %1511  ;;  %v984_v20 = vmul.f32 1.442695, %v983_v18 }
 0x204   :  { %966 = vadd.xlane.f32.xlu1 %v1512_v19 }
 0x205   :  { %1513 = vpow2.f32 %v984_v20 }
 0x206   :  { %1515 = vrcp.f32 %v1780_v22 }
 0x20b   :  { %v1514_v21 = vpop.eup %1513 }
 0x20c   :  { %986 = vadd.xlane.f32.xlu1 %v1514_v21  ;;  %v1516_v23 = vpop.eup %1515 }
 0x20d   :  { %v972_v24 = vmul.f32 10.0, %v1516_v23  ;;  %vm976_vm1 = vweird.f32 %v1516_v23 }
 0x20f   :  { %v973_v26 = vsub.f32 1.0, %v972_v24 }
 0x211   :  { %v974_v28 = vmul.f32 %v1516_v23, %v973_v26 }
 0x213   :  { %v975_v32 = vadd.f32 %v1516_v23, %v974_v28 }
 0x215   :  { %v977_v35 = vsel %vm976_vm1, %v1516_v23, %v975_v32 }
 0x277   :  { %v967_v25 = vpop.xlane.xlu1 %966 }
 0x278   :  { %1517 = vlog2.f32 %v967_v25 }
 0x27e   :  { %v1518_v27 = vpop.eup %1517 }
 0x27f   :  { %v987_v29 = vpop.xlane.xlu1 %986  ;;  %v969_v30 = vmul.f32 0.6931472, %v1518_v27 }
 0x280   :  { %1519 = vlog2.f32 %v987_v29 }
 0x281   :  { %v970_v33 = vadd.f32 %v969_v30, %v962_v14 }
 0x283   :  { %v978_v37 = vmul.f32 %v977_v35, %v970_v33 }
 0x285   :  { %v979_v40 = vmul.f32 %v978_v37, %v1873_v31 }
 0x286   :  { %v1520_v34 = vpop.eup %1519 }
 0x287   :  { %v989_v36 = vmul.f32 0.6931472, %v1520_v34 }
 0x289   :  { %v990_v38 = vadd.f32 %v989_v36, %v982_v17 }
 0x28b   :  { %v991_v39 = vmul.f32 %v990_v38, %v977_v35 }
 0x28d   :  { %v992_v41 = vmul.f32 %v991_v39, %v860_v1 }
 0x28f   :  { %v993_v42 = vadd.f32 %v992_v41, %v979_v40 }
 0x291   :  { %v994_v43 = vpack.c.bf16 %v993_v42, %v993_v42 }
 0x293   :  { %1003 = vmatmul.bf16.vlgmr.msra.gmra.mxu2 %v994_v43 }
 0x316   :  { %v1004_v31 = vpop.f32.mrf.mxu2 }
 0x317   :  { %v1005_v44 = vadd.f32 %v1884_v7, %v1004_v31 }
 0x319   :  { %1008 = vst [vmem:[#allocation13] sm:$0xff] %v1005_v44 }
 0x31a   :  { %1019 = dma.vmem_to_hbm [thread:$0]  %s1015_s26, 128, %s1017_s3, [#allocation6]  }
 0x31e   :  { %v1006_v45 = vpop.f32.mrf.mxu2 }
 0x31f   :  { %1767 = dma.done.wait [#allocation6], 128  }
 0x320   :  { %1768 = vsyncadd [#allocation6], 4294967168 }
 0x321   :  { %1769 = dma.done.wait [#allocation15], 256  }
 0x322   :  { %1770 = vsyncadd [#allocation15], 4294967040 }
 0x323   :  { %1771 = dma.done.wait [#allocation18], 256  }
 0x324   :  { %1772 = vsyncadd [#allocation18], 4294967040 }
 0x325   :  { %1084 = vsyncpa [#allocation5], 1 }
 0x326   :  { %1085 = vsyncpa [#allocation8], 1 }
 0x327   :  { %1086 = vsyncpa [#allocation11], 1 }
 0x328   :  { %1087 = vsyncpa [#allocation6], 1 }
 0x329   :  { %1088 = vsyncpa [#allocation15], 1 }
 0x32a   :  { %1089 = vsyncpa [#allocation18], 1 }

</bundles_post_ra>
